<compile_context>
chip_gen: v5e
topology: v5e:2x2
jax: 0.10.0
libtpu: 0.0.40
codegen_flags: <defaults>
</compile_context>

<pallas_src>
import functools

import jax
import jax.numpy as jnp
from jax.experimental import pallas as pl
from jax.experimental.pallas import tpu as pltpu


def _round_up(x, m):
    return (x + m - 1) // m * m


def _i32(x):
    """Python int -> int32 two's-complement value (same low 32 bits)."""
    x &= 0xFFFFFFFF
    return x - (1 << 32) if x >= (1 << 31) else x


# lowbias32-style mixing constants (given as int32 so all math stays signed).
_MIX_R = _i32(0x9E3779B1)
_MIX_C = _i32(0x85EBCA77)
_MIX_1 = _i32(0x7FEB352D)
_MIX_2 = _i32(0x846CA68B)


def _lshr32(z, k):
    """Logical right shift for int32 (arithmetic shift + mask)."""
    return (z >> k) & jnp.int32((1 << (32 - k)) - 1)


def _bits31(rows_i32, cols_i32, seed_i32):
    """Deterministic 31-bit uniform ints from (row, col, seed). Pure jnp ops,
    identical results in-kernel, in interpret mode, and in plain JAX."""
    z = rows_i32 * jnp.int32(_MIX_R) + cols_i32 * jnp.int32(_MIX_C) + seed_i32
    z = z ^ _lshr32(z, 16)
    z = z * jnp.int32(_MIX_1)
    z = z ^ _lshr32(z, 15)
    z = z * jnp.int32(_MIX_2)
    z = z ^ _lshr32(z, 16)
    return z & jnp.int32(0x7FFFFFFF)


def _pick_tm(batch, block_m):
    """Row tile: full extent for tiny batches, otherwise a multiple of 8 giving
    at least two grid steps (v7x has 2 TensorCores), capped at block_m."""
    if batch <= 8:
        return max(int(batch), 1)
    tm = _round_up((batch + 1) // 2, 8)
    return int(max(8, min(int(block_m), tm)))


def _merge_kernel(seed_ref, xe_ref, x1_ref, x2_ref, we_ref, w1_ref, w2_ref,
                  b_ref, o_ref, *, h_pad, e_dim, h_dim, apply_dropout,
                  drop_thresh, inv_keep):
    xe = xe_ref[...]                          # [TM, E]  native dtype
    x1 = x1_ref[...]                          # [TM, H]
    x2 = x2_ref[...]                          # [TM, H]

    if apply_dropout:
        seed = seed_ref[0]                    # runtime int32 scalar (SMEM)
        row0 = pl.program_id(0) * xe.shape[0]

        def drop(x, col0):
            rows = jax.lax.broadcasted_iota(jnp.int32, x.shape, 0) + row0
            cols = jax.lax.broadcasted_iota(jnp.int32, x.shape, 1) + col0
            keep = _bits31(rows, cols, seed) >= jnp.int32(drop_thresh)
            return jnp.where(keep, x * jnp.asarray(inv_keep, x.dtype),
                             jnp.zeros_like(x))

        # Column offsets mirror the concat layout [node | st1 | st2], so this is
        # exactly independent dropout on each input (== PyTorch semantics).
        xe = drop(xe, 0)
        x1 = drop(x1, e_dim)
        x2 = drop(x2, e_dim + h_dim)

    # Feed the MXU in the packed-weight dtype (e.g. bf16 if params were packed
    # that way); accumulation stays f32 via preferred_element_type.
    wd = we_ref.dtype
    if xe.dtype != wd:
        xe = xe.astype(wd)
        x1 = x1.astype(wd)
        x2 = x2.astype(wd)

    # One fused result for both Linear layers: weights are [Din, 2*H_p] split
    # into three K-slabs (node / st1 / st2) so no concat is ever materialized.
    y = jnp.dot(xe, we_ref[...], preferred_element_type=jnp.float32)
    y = y + jnp.dot(x1, w1_ref[...], preferred_element_type=jnp.float32)
    y = y + jnp.dot(x2, w2_ref[...], preferred_element_type=jnp.float32)
    y = y + b_ref[...]                        # f32 bias [1, 2*H_p] broadcasts

    t = jnp.tanh(y[:, :h_pad])                # merge   branch (EUP)
    g = jax.nn.sigmoid(y[:, h_pad:])          # merge_g branch (EUP)
    o_ref[...] = (t * g).astype(o_ref.dtype)


def pack_merge_params(w_merge, b_merge, w_merge_g, b_merge_g, embedding_size,
                      *, param_dtype=None):
    """Pack both Linear layers ONCE into the kernel layout (call this outside
    the training loop and reuse the result).

    Torch layout in: w_* = [H, 2H+E], b_* = [H].
    Out: dict with three K-slabs of the transposed, output-lane-padded weight
    ([E,2*H_p], [H,2*H_p], [H,2*H_p]), an f32 bias [1, 2*H_p], and sizes.
    """
    w_merge = jnp.asarray(w_merge)
    w_merge_g = jnp.asarray(w_merge_g)
    H, Din = w_merge.shape
    E = int(embedding_size)
    assert Din == 2 * H + E, "weight shape inconsistent with embedding_size"
    if param_dtype is None:
        param_dtype = w_merge.dtype

    H_p = _round_up(H, 128)

    def pack(w):                              # [H, Din] -> [Din, H_p]
        wt = jnp.asarray(w, param_dtype).T
        return jnp.pad(wt, ((0, 0), (0, H_p - H)))

    w_all = jnp.concatenate([pack(w_merge), pack(w_merge_g)], axis=1)  # [Din, 2*H_p]

    b = jnp.zeros((1, 2 * H_p), jnp.float32)
    b = b.at[0, :H].set(jnp.asarray(b_merge, jnp.float32))
    b = b.at[0, H_p:H_p + H].set(jnp.asarray(b_merge_g, jnp.float32))

    return {
        "w_node": w_all[:E],                  # [E, 2*H_p]
        "w_st1": w_all[E:E + H],              # [H, 2*H_p]
        "w_st2": w_all[E + H:],               # [H, 2*H_p]
        "bias": b,                            # [1, 2*H_p] f32
        "hidden_size": H,
        "embedding_size": E,
    }


def merge_forward(node_embedding, sub_tree_1, sub_tree_2, params, *,
                  dropout=0.5, training=False, seed=0, block_m=256):
    """Fused forward of the PyTorch `Merge` module.

    node_embedding: [B, E], sub_tree_1/2: [B, H]; params from pack_merge_params.
    training=False -> dropout is the identity (module.eval() semantics).
    `seed` is a runtime value (int or JAX scalar); vary it per step for fresh
    dropout masks — changing it does NOT trigger a recompile.
    """
    B, E = node_embedding.shape
    H = params["hidden_size"]
    assert E == params["embedding_size"]
    assert sub_tree_1.shape == (B, H) and sub_tree_2.shape == (B, H)
    dtype = node_embedding.dtype

    N_p = params["w_node"].shape[1]
    H_p = N_p // 2
    Din = E + 2 * H

    TM = _pick_tm(B, block_m)
    grid = (pl.cdiv(B, TM),)

    apply_dropout = bool(training) and (dropout is not None) and float(dropout) > 0.0
    if apply_dropout:
        p = float(dropout)
        if p >= 1.0:
            raise ValueError("dropout must be < 1.0 in training mode")
        drop_thresh = min(int(round(p * (1 << 31))), (1 << 31) - 1)
        inv_keep = 1.0 / (1.0 - p)
    else:
        drop_thresh, inv_keep = 0, 1.0

    kernel = functools.partial(
        _merge_kernel, h_pad=H_p, e_dim=E, h_dim=H,
        apply_dropout=apply_dropout, drop_thresh=drop_thresh, inv_keep=inv_keep)

    x_item = jnp.dtype(dtype).itemsize
    w_item = jnp.dtype(params["w_node"].dtype).itemsize
    act_tile = TM * Din * x_item
    w_bytes = Din * N_p * w_item
    out_tile = TM * H_p * x_item
    epi_bytes = 3 * TM * N_p * 4              # f32 y / tanh / sigmoid intermediates
    vmem_need = 2 * act_tile + w_bytes + N_p * 4 + 2 * out_tile + epi_bytes + (2 << 20)
    try:
        vmem_cap = pltpu.get_tpu_info().vmem_capacity_bytes
    except Exception:
        vmem_cap = 128 << 20                  # conservative default (v5e/v6e)
    vmem_limit = int(max(32 << 20, min(vmem_need, (vmem_cap * 3) // 4)))
    # TODO(synk): if the packed weight alone exceeds ~3/4 of VMEM (very large
    # H/Din), add K/N grid axes with an f32 VMEM accumulator instead of keeping
    # the whole weight resident.

    cost = pl.CostEstimate(
        flops=2 * B * Din * N_p,
        transcendentals=2 * B * H_p,
        bytes_accessed=B * Din * x_item + w_bytes + N_p * 4 + B * H_p * x_item)

    seed_arr = jnp.asarray(seed, jnp.int32).reshape((1,))

    out = pl.pallas_call(
        kernel,
        out_shape=jax.ShapeDtypeStruct((B, H_p), dtype),
        grid_spec=pltpu.PrefetchScalarGridSpec(
            num_scalar_prefetch=1,            # seed lives in SMEM at runtime
            grid=grid,
            in_specs=[
                pl.BlockSpec((TM, E), lambda i, s: (i, 0)),    # node rows
                pl.BlockSpec((TM, H), lambda i, s: (i, 0)),    # sub_tree_1 rows
                pl.BlockSpec((TM, H), lambda i, s: (i, 0)),    # sub_tree_2 rows
                pl.BlockSpec((E, N_p), lambda i, s: (0, 0)),   # weight slab (resident)
                pl.BlockSpec((H, N_p), lambda i, s: (0, 0)),   # weight slab (resident)
                pl.BlockSpec((H, N_p), lambda i, s: (0, 0)),   # weight slab (resident)
                pl.BlockSpec((1, N_p), lambda i, s: (0, 0)),   # f32 bias (resident)
            ],
            out_specs=pl.BlockSpec((TM, H_p), lambda i, s: (i, 0)),
        ),
        compiler_params=pltpu.CompilerParams(
            dimension_semantics=("parallel",),
            vmem_limit_bytes=vmem_limit),
        cost_estimate=cost,
    )(seed_arr, node_embedding, sub_tree_1, sub_tree_2,
      params["w_node"], params["w_st1"], params["w_st2"], params["bias"])

    return out[:, :H] if H_p != H else out


if __name__ == "__main__":
    key = jax.random.PRNGKey(0)
    B, H, E = 2, 32, 16            # batch, hidden_size, embedding_size
    Din = 2 * H + E
    k = jax.random.split(key, 7)

    node = jax.random.normal(k[0], (B, E), jnp.float32)
    st1 = jax.random.normal(k[1], (B, H), jnp.float32)
    st2 = jax.random.normal(k[2], (B, H), jnp.float32)

    # nn.Linear-style init, torch weight layout [out_features, in_features].
    bound = 1.0 / (Din ** 0.5)
    w_m = jax.random.uniform(k[3], (H, Din), jnp.float32, -bound, bound)
    b_m = jax.random.uniform(k[4], (H,), jnp.float32, -bound, bound)
    w_g = jax.random.uniform(k[5], (H, Din), jnp.float32, -bound, bound)
    b_g = jax.random.uniform(k[6], (H,), jnp.float32, -bound, bound)

    # Pack weights ONCE; reuse across forward calls.
    params = pack_merge_params(w_m, b_m, w_g, b_g, E)

    xcat = jnp.concatenate([node, st1, st2], axis=1)

    # --- Eval-mode forward (dropout = identity) — matches Merge().eval(). ---
    y = merge_forward(node, st1, st2, params, dropout=0.5, training=False)
    y = jax.block_until_ready(y)
    ref = jnp.tanh(xcat @ w_m.T + b_m) * jax.nn.sigmoid(xcat @ w_g.T + b_g)
    assert y.shape == (B, H) and y.dtype == node.dtype
    assert jnp.allclose(y, ref, atol=1e-3, rtol=1e-3), "eval-mode mismatch vs reference"

    # --- Training-mode forward: reproduce the same hash-based mask in pure JAX. ---
    seed, p = 123, 0.5
    y_tr = merge_forward(node, st1, st2, params, dropout=p, training=True, seed=seed)
    y_tr = jax.block_until_ready(y_tr)

    rows = jnp.broadcast_to(jnp.arange(B, dtype=jnp.int32)[:, None], (B, Din))
    cols = jnp.broadcast_to(jnp.arange(Din, dtype=jnp.int32)[None, :], (B, Din))
    thresh = min(int(round(p * (1 << 31))), (1 << 31) - 1)
    keep = _bits31(rows, cols, jnp.int32(seed)) >= jnp.int32(thresh)
    xdrop = jnp.where(keep, xcat * jnp.asarray(1.0 / (1.0 - p), jnp.float32),
                      jnp.zeros_like(xcat))
    ref_tr = jnp.tanh(xdrop @ w_m.T + b_m) * jax.nn.sigmoid(xdrop @ w_g.T + b_g)
    assert y_tr.shape == (B, H) and bool(jnp.all(jnp.isfinite(y_tr)))
    assert jnp.allclose(y_tr, ref_tr, atol=1e-3, rtol=1e-3), "training-mode mismatch"

    print("KERNEL_OK")
</pallas_src>

<mosaic_0001>
module attributes {stable_mosaic.version = 11 : i64} {
  func.func @_merge_kernel(%arg0: i32, %arg1: memref<1xi32, #tpu.memory_space<smem>>, %arg2: memref<2x16xf32, #tpu.memory_space<vmem>>, %arg3: memref<2x32xf32, #tpu.memory_space<vmem>>, %arg4: memref<2x32xf32, #tpu.memory_space<vmem>>, %arg5: memref<16x256xf32, #tpu.memory_space<vmem>>, %arg6: memref<32x256xf32, #tpu.memory_space<vmem>>, %arg7: memref<32x256xf32, #tpu.memory_space<vmem>>, %arg8: memref<1x256xf32, #tpu.memory_space<vmem>>, %arg9: memref<2x128xf32, #tpu.memory_space<vmem>>) attributes {dimension_semantics = [#tpu.dimension_semantics<parallel>], iteration_bounds = array<i64: 1>, scalar_prefetch = 1 : i64, scratch_operands = 0 : i64, tpu.core_type = #tpu.core_type<tc>, window_params = [{transform_indices = @transform_0, window_bounds = array<i64: 2, 16>}, {transform_indices = @transform_1, window_bounds = array<i64: 2, 32>}, {transform_indices = @transform_2, window_bounds = array<i64: 2, 32>}, {pipeline_mode = #tpu.pipeline_mode<synchronous>, transform_indices = @transform_3, window_bounds = array<i64: 16, 256>}, {pipeline_mode = #tpu.pipeline_mode<synchronous>, transform_indices = @transform_4, window_bounds = array<i64: 32, 256>}, {pipeline_mode = #tpu.pipeline_mode<synchronous>, transform_indices = @transform_5, window_bounds = array<i64: 32, 256>}, {pipeline_mode = #tpu.pipeline_mode<synchronous>, transform_indices = @transform_6, window_bounds = array<i64: 1, 256>}, {transform_indices = @transform_7, window_bounds = array<i64: 2, 128>}]} {
    %c0 = arith.constant 0 : index
    %c0_0 = arith.constant 0 : index
    %0 = vector.load %arg2[%c0, %c0_0] : memref<2x16xf32, #tpu.memory_space<vmem>>, vector<2x16xf32>
    %c0_1 = arith.constant 0 : index
    %c0_2 = arith.constant 0 : index
    %1 = vector.load %arg3[%c0_1, %c0_2] : memref<2x32xf32, #tpu.memory_space<vmem>>, vector<2x32xf32>
    %c0_3 = arith.constant 0 : index
    %c0_4 = arith.constant 0 : index
    %2 = vector.load %arg4[%c0_3, %c0_4] : memref<2x32xf32, #tpu.memory_space<vmem>>, vector<2x32xf32>
    %c0_5 = arith.constant 0 : index
    %c0_6 = arith.constant 0 : index
    %3 = vector.load %arg5[%c0_5, %c0_6] : memref<16x256xf32, #tpu.memory_space<vmem>>, vector<16x256xf32>
    %cst = arith.constant dense<0.000000e+00> : vector<2x256xf32>
    %4 = tpu.matmul %0, %3, %cst {dimension_numbers = #tpu.dot_dimension_numbers<[1], [0], [0], [1], [0, 0, 1, 1], [], []>} : vector<2x16xf32>, vector<16x256xf32>, vector<2x256xf32> -> vector<2x256xf32>
    %c0_7 = arith.constant 0 : index
    %c0_8 = arith.constant 0 : index
    %5 = vector.load %arg6[%c0_7, %c0_8] : memref<32x256xf32, #tpu.memory_space<vmem>>, vector<32x256xf32>
    %cst_9 = arith.constant dense<0.000000e+00> : vector<2x256xf32>
    %6 = tpu.matmul %1, %5, %cst_9 {dimension_numbers = #tpu.dot_dimension_numbers<[1], [0], [0], [1], [0, 0, 1, 1], [], []>} : vector<2x32xf32>, vector<32x256xf32>, vector<2x256xf32> -> vector<2x256xf32>
    %7 = arith.addf %4, %6 : vector<2x256xf32>
    %c0_10 = arith.constant 0 : index
    %c0_11 = arith.constant 0 : index
    %8 = vector.load %arg7[%c0_10, %c0_11] : memref<32x256xf32, #tpu.memory_space<vmem>>, vector<32x256xf32>
    %cst_12 = arith.constant dense<0.000000e+00> : vector<2x256xf32>
    %9 = tpu.matmul %2, %8, %cst_12 {dimension_numbers = #tpu.dot_dimension_numbers<[1], [0], [0], [1], [0, 0, 1, 1], [], []>} : vector<2x32xf32>, vector<32x256xf32>, vector<2x256xf32> -> vector<2x256xf32>
    %10 = arith.addf %7, %9 : vector<2x256xf32>
    %c0_13 = arith.constant 0 : index
    %c0_14 = arith.constant 0 : index
    %11 = vector.load %arg8[%c0_13, %c0_14] : memref<1x256xf32, #tpu.memory_space<vmem>>, vector<1x256xf32>
    %12 = vector.broadcast %11 : vector<1x256xf32> to vector<2x256xf32>
    %13 = arith.addf %10, %12 : vector<2x256xf32>
    %14 = vector.extract_strided_slice %13 {offsets = [0, 0], sizes = [2, 128], strides = [1, 1]} : vector<2x256xf32> to vector<2x128xf32>
    %15 = math.tanh %14 : vector<2x128xf32>
    %16 = vector.extract_strided_slice %13 {offsets = [0, 128], sizes = [2, 128], strides = [1, 1]} : vector<2x256xf32> to vector<2x128xf32>
    %17 = arith.negf %16 : vector<2x128xf32>
    %18 = math.exp %17 : vector<2x128xf32>
    %cst_15 = arith.constant 1.000000e+00 : f32
    %19 = vector.broadcast %cst_15 : f32 to vector<2x128xf32>
    %20 = arith.addf %19, %18 : vector<2x128xf32>
    %21 = arith.divf %19, %20 : vector<2x128xf32>
    %22 = arith.mulf %15, %21 : vector<2x128xf32>
    %c0_16 = arith.constant 0 : index
    %c0_17 = arith.constant 0 : index
    %23 = vector.load %arg9[%c0_16, %c0_17] : memref<2x128xf32, #tpu.memory_space<vmem>>, vector<2x128xf32>
    tpu.vector_store %arg9[%c0_16, %c0_17], %22 {strides = array<i32>} : memref<2x128xf32, #tpu.memory_space<vmem>>, vector<2x128xf32>,
    return
  }
  func.func @transform_0(%arg0: i32, %arg1: memref<1xi32, #tpu.memory_space<smem>>) -> (i32, i32) {
    %c0_i32 = arith.constant 0 : i32
    %c0_i32_0 = arith.constant 0 : i32
    return %arg0, %c0_i32 : i32, i32
  }
  func.func @transform_1(%arg0: i32, %arg1: memref<1xi32, #tpu.memory_space<smem>>) -> (i32, i32) {
    %c0_i32 = arith.constant 0 : i32
    %c0_i32_0 = arith.constant 0 : i32
    return %arg0, %c0_i32 : i32, i32
  }
  func.func @transform_2(%arg0: i32, %arg1: memref<1xi32, #tpu.memory_space<smem>>) -> (i32, i32) {
    %c0_i32 = arith.constant 0 : i32
    %c0_i32_0 = arith.constant 0 : i32
    return %arg0, %c0_i32 : i32, i32
  }
  func.func @transform_3(%arg0: i32, %arg1: memref<1xi32, #tpu.memory_space<smem>>) -> (i32, i32) {
    %c0_i32 = arith.constant 0 : i32
    %c0_i32_0 = arith.constant 0 : i32
    %c0_i32_1 = arith.constant 0 : i32
    return %c0_i32, %c0_i32_0 : i32, i32
  }
  func.func @transform_4(%arg0: i32, %arg1: memref<1xi32, #tpu.memory_space<smem>>) -> (i32, i32) {
    %c0_i32 = arith.constant 0 : i32
    %c0_i32_0 = arith.constant 0 : i32
    %c0_i32_1 = arith.constant 0 : i32
    return %c0_i32, %c0_i32_0 : i32, i32
  }
  func.func @transform_5(%arg0: i32, %arg1: memref<1xi32, #tpu.memory_space<smem>>) -> (i32, i32) {
    %c0_i32 = arith.constant 0 : i32
    %c0_i32_0 = arith.constant 0 : i32
    %c0_i32_1 = arith.constant 0 : i32
    return %c0_i32, %c0_i32_0 : i32, i32
  }
  func.func @transform_6(%arg0: i32, %arg1: memref<1xi32, #tpu.memory_space<smem>>) -> (i32, i32) {
    %c0_i32 = arith.constant 0 : i32
    %c0_i32_0 = arith.constant 0 : i32
    %c0_i32_1 = arith.constant 0 : i32
    return %c0_i32, %c0_i32_0 : i32, i32
  }
  func.func @transform_7(%arg0: i32, %arg1: memref<1xi32, #tpu.memory_space<smem>>) -> (i32, i32) {
    %c0_i32 = arith.constant 0 : i32
    %c0_i32_0 = arith.constant 0 : i32
    return %arg0, %c0_i32 : i32, i32
  }
}

</mosaic_0001>

<bundles_post_ra>
// kernel: tpu_custom_call.1
= control target key start
LH: loop header
LB: loop body
LE: loop exit
PB: predicated region body
PF: predicated region fallthrough
CT: control target
= control target key end

     0   :  { %14 = vsyncpa [#allocation5], 0  ;;  %s564_s0 = inlined_call_operand.<no memory space> [shape: s32[1], index: 0, kind: input, shape index: {}]   ;;  %s565_s1 = inlined_call_operand.vmem [shape: f32[2,16], index: 1, kind: input, shape index: {}]   ;;  %s566_s2 = inlined_call_operand.hbm [shape: f32[2,32], index: 2, kind: input, shape index: {}]   ;;  %s567_s3 = inlined_call_operand.hbm [shape: f32[2,32], index: 3, kind: input, shape index: {}]   ;;  %s568_s4 = inlined_call_operand.hbm [shape: f32[16,256], index: 4, kind: input, shape index: {}]   ;;  %s569_s5 = inlined_call_operand.hbm [shape: f32[32,256], index: 5, kind: input, shape index: {}]   ;;  %s570_s6 = inlined_call_operand.hbm [shape: f32[32,256], index: 6, kind: input, shape index: {}]   ;;  %s571_s7 = inlined_call_operand.vmem [shape: f32[1,256], index: 7, kind: input, shape index: {}]   ;;  %s572_s8 = inlined_call_operand.hbm [shape: f32[2,128], index: 8, kind: output, shape index: {}]  }
   0x1   :  { %15 = vsyncpa [#allocation8], 0 }
   0x2   :  { %16 = vsyncpa [#allocation11], 0  ;;  %s36_s28 = sshll.u32 %s567_s3, 4  ;;  %s37_s28 = int_to_ptr.hbm [resolvable:$true] %s36_s28 }
   0x3   :  { %17 = vsyncpa [#allocation6], 0  ;;  %s481_s29 = smov [#allocation7]   ;;  %s59_s11 = sshll.u32 %s569_s5, 4  ;;  %s60_s11 = int_to_ptr.hbm [resolvable:$true] %s59_s11 }
   0x4   :  { %s38_s30 = sshll.u32 %s481_s29, 4  ;;  %s482_s12 = smov [#allocation10]   ;;  %s39_s30 = int_to_ptr.vmem [resolvable:$true] %s38_s30 }
   0x5   :  { %41 = dma.hbm_to_vmem [thread:$0]  %s37_s28, 32, %s39_s30, [#allocation8]  }
   0x6   :  { %s61_s13 = sshll.u32 %s482_s12, 4  ;;  %s25_s16 = sshll.u32 %s566_s2, 4  ;;  %s62_s13 = int_to_ptr.vmem [resolvable:$true] %s61_s13  ;;  %s26_s16 = int_to_ptr.hbm [resolvable:$true] %s25_s16 }
   0x7   :  { %s483_s3 = smov 256   ;;  %s484_s17 = smov 16  }
   0x8   :  { %67 = dma.hbm_to_vmem [thread:$0]  %s60_s11, 1024, %s62_s13, [#allocation11], %s483_s3, %s483_s3, %s484_s17  }
   0x9   :  { %s46_s20 = sshll.u32 %s568_s4, 4  ;;  %s485_s21 = smov [#allocation4]   ;;  %s47_s20 = int_to_ptr.hbm [resolvable:$true] %s46_s20 }
   0xa   :  { %s27_s22 = sshll.u32 %s485_s21, 4  ;;  %s486_s5 = smov [#allocation9]   ;;  %s28_s22 = int_to_ptr.vmem [resolvable:$true] %s27_s22 }
   0xb   :  { %30 = dma.hbm_to_vmem [thread:$0]  %s26_s16, 32, %s28_s22, [#allocation5]  }
   0xc   :  { %s48_s23 = sshll.u32 %s486_s5, 4  ;;  %s72_s2 = sshll.u32 %s570_s6, 4  ;;  %s49_s23 = int_to_ptr.vmem [resolvable:$true] %s48_s23  ;;  %s73_s2 = int_to_ptr.hbm [resolvable:$true] %s72_s2 }
   0xd   :  { %54 = dma.hbm_to_vmem [thread:$0]  %s47_s20, 512, %s49_s23, [#allocation8], %s483_s3, %s483_s3, %s484_s17  }
   0xe   :  { %s487_s25 = smov [#allocation12]  }
   0xf   :  { %s74_s26 = sshll.u32 %s487_s25, 4  ;;  %s75_s26 = int_to_ptr.vmem [resolvable:$true] %s74_s26 }
  0x10   :  { %80 = dma.hbm_to_vmem [thread:$0]  %s73_s2, 1024, %s75_s26, [#allocation11], %s483_s3, %s483_s3, %s484_s17  }
  0x11   :  { %473 = dma.done.wait [#allocation5], 32  }
  0x12   :  { %474 = vsyncadd [#allocation5], 4294967264 }
  0x13   :  { %475 = dma.done.wait [#allocation8], 544  }
  0x14   :  { %476 = vsyncadd [#allocation8], 4294966752 }
  0x15   :  { %477 = dma.done.wait [#allocation11], 2048  }
  0x16   :  { %478 = vsyncadd [#allocation11], 4294965248  ;;  %v109_v0 = vld [vmem:[#allocation9 + $0x18] sm:$0xff]  ;;  %v107_v2 = vld [vmem:[#allocation9 + $0x8] sm:$0xff]  ;;  %vm162_vm0 = vcmask 130048   ;;  %vm118_vm1 = vcmask 261120  }
  0x17   :  { %v117_v1 = vld [vmem:[#allocation10 + $0x38] sm:$0xff]  ;;  %200 = vmatpush.msra.mxu3 %v109_v0  ;;  %v115_v4 = vld [vmem:[#allocation10 + $0x28] sm:$0xff]  ;;  %v108_v9 = vld [vmem:[#allocation9 + $0x10] sm:$0xff]  ;;  %s296_s9 = sshll.u32 %s572_s8, 4  ;;  %s297_s9 = int_to_ptr.hbm [resolvable:$true] %s296_s9 }
  0x18   :  { %154 = vmatpush.msra.mxu1 %v117_v1  ;;  %v103_v3 = vld [vmem:[%s565_s1] sm:$0x3]  ;;  %v211_v7 = vld [vmem:[#allocation12 + $0x28] sm:$0xff]  ;;  %v106_v11 = vld [vmem:[#allocation9] sm:$0xff]  ;;  %180 = vmatpush.msra.mxu2 %v108_v9 }
  0x19   :  { %v213_v5 = vld [vmem:[#allocation12 + $0x38] sm:$0xff]  ;;  %201 = vmatpush.msra.mxu3 %v107_v2  ;;  %v111_v8 = vld [vmem:[#allocation10 + $0x8] sm:$0xff]  ;;  %v116_v12 = vld [vmem:[#allocation10 + $0x30] sm:$0xff] }
  0x1a   :  { %v113_v6 = vld [vmem:[#allocation10 + $0x18] sm:$0xff]  ;;  %155 = vmatpush.msra.mxu1 %v115_v4  ;;  %311 = vmatmul.msk.f32.vlgmr.msra.gmra.mxu3 %vm162_vm0, %v103_v3  ;;  %v212_v14 = vld [vmem:[#allocation12 + $0x30] sm:$0xff]  ;;  %v114_v15 = vld [vmem:[#allocation10 + $0x20] sm:$0xff] }
  0x1b   :  { %249 = vmatpush.msrb.mxu3 %v213_v5  ;;  %v104_v10 = vld [vmem:[#allocation4] sm:$0x3]  ;;  %134 = vmatpush.msra.mxu0 %v116_v12  ;;  %v207_v16 = vld [vmem:[#allocation12 + $0x8] sm:$0xff]  ;;  %v105_v17 = vld [vmem:[#allocation7] sm:$0x3] }
  0x1c   :  { %156 = vmatpush.msra.mxu1 %v113_v6  ;;  %v209_v13 = vld [vmem:[#allocation12 + $0x18] sm:$0xff]  ;;  %181 = vmatpush.msra.mxu2 %v106_v11  ;;  %v210_v18 = vld [vmem:[#allocation12 + $0x20] sm:$0xff]  ;;  %v112_v19 = vld [vmem:[#allocation10 + $0x10] sm:$0xff] }
  0x1d   :  { %250 = vmatpush.msrb.mxu3 %v211_v7  ;;  %310 = vmatmul.msk.f32.vlgmr.msra.gmra.mxu2 %vm162_vm0, %v103_v3  ;;  %v208_v20 = vld [vmem:[#allocation12 + $0x10] sm:$0xff]  ;;  %v110_v21 = vld [vmem:[#allocation10] sm:$0xff]  ;;  %v259_v25 = vld [vmem:[%s571_s7] sm:$0x3]  ;;  %s488_s7 = smov [#allocation13]  }
  0x1e   :  { %157 = vmatpush.msra.mxu1 %v111_v8  ;;  %229 = vmatpush.msrb.mxu2 %v212_v14  ;;  %v206_v22 = vld [vmem:[#allocation12] sm:$0xff]  ;;  %v262_v27 = vperm.slane %v259_v25, 1  ;;  %v261_v39 = vperm.slane %v259_v25, 0  ;;  %s294_s28 = sshll.u32 %s488_s7, 4  ;;  %s295_s28 = int_to_ptr.vmem [resolvable:$true] %s294_s28 }
  0x1f   :  { %309 = vmatmul.msk.f32.vlgmr.msra.gmra.mxu1 %vm118_vm1, %v104_v10  ;;  %251 = vmatpush.msrb.mxu3 %v209_v13 }
  0x20   :  { %135 = vmatpush.msra.mxu0 %v114_v15  ;;  %230 = vmatpush.msrb.mxu2 %v210_v18 }
  0x21   :  { %252 = vmatpush.msrb.mxu3 %v207_v16 }
  0x22   :  { %313 = vmatmul.msk.f32.vlgmr.msrb.gmra.mxu3 %vm118_vm1, %v105_v17  ;;  %136 = vmatpush.msra.mxu0 %v112_v19 }
  0x23   :  { %231 = vmatpush.msrb.mxu2 %v208_v20 }
  0x24   :  { %137 = vmatpush.msra.mxu0 %v110_v21 }
  0x25   :  { %232 = vmatpush.msrb.mxu2 %v206_v22  ;;  %308 = vmatmul.msk.f32.vlgmr.msra.gmra.mxu0 %vm118_vm1, %v104_v10 }
  0x26   :  { %312 = vmatmul.msk.f32.vlgmr.msrb.gmra.mxu2 %vm118_vm1, %v105_v17 }
  0x9c   :  { %v159_v24 = vpop.f32.mrf.mxu1 }
  0x9d   :  { %v203_v23 = vpop.f32.mrf.mxu3 }
  0x9e   :  { %v204_v26 = vadd.f32 %v203_v23, %v159_v24 }
  0xa0   :  { %v183_v32 = vpop.f32.mrf.mxu2 }
  0xa2   :  { %v139_v33 = vpop.f32.mrf.mxu0 }
  0xa3   :  { %v184_v36 = vadd.f32 %v183_v32, %v139_v33 }
  0xa5   :  { %v254_v28 = vpop.f32.mrf.mxu3 }
  0xa6   :  { %v258_v29 = vadd.f32 %v254_v28, %v204_v26 }
  0xa8   :  { %v266_v30 = vadd.f32 %v262_v27, %v258_v29 }
  0xa9   :  { %v234_v37 = vpop.f32.mrf.mxu2 }
  0xaa   :  { %v314_v31 = vmul.f32 -1.442695, %v266_v30  ;;  %v257_v38 = vadd.f32 %v234_v37, %v184_v36 }
  0xac   :  { %323 = vpow2.f32 %v314_v31  ;;  %v265_v41 = vadd.f32 %v261_v39, %v257_v38 }
  0xb2   :  { %v324_v34 = vpop.eup %323 }
  0xb3   :  { %v271_v35 = vadd.f32 1.0, %v324_v34 }
  0xb5   :  { %325 = vrcp.f32 %v271_v35  ;;  %v283_v44 = vand.u32 2147483648, %v271_v35  ;;  %v281_v46 = vand.u32 2147483647, %v271_v35  ;;  %vm277_vm3 = vweird.f32 %v271_v35 }
  0xb6   :  { %327 = vtanh.f32 %v265_v41 }
  0xb7   :  { %v284_v48 = vor.u32 1.1754944e-38, %v283_v44  ;;  %vm282_vm5 = vcmp.eq.f32.partialorder %v281_v46, 8.507059e+37 }
  0xbb   :  { %v326_v40 = vpop.eup %325 }
  0xbc   :  { %v273_v42 = vmul.f32 %v326_v40, %v271_v35  ;;  %vm278_vm2 = vweird.f32 %v326_v40  ;;  %v328_v50 = vpop.eup %327 }
  0xbd   :  { %vm279_vm4 = vmor %vm277_vm3, %vm278_vm2 }
  0xbe   :  { %v274_v43 = vsub.f32 1.0, %v273_v42 }
  0xc0   :  { %v275_v45 = vmul.f32 %v326_v40, %v274_v43 }
  0xc2   :  { %v276_v47 = vadd.f32 %v326_v40, %v275_v45 }
  0xc4   :  { %v280_v49 = vsel %vm279_vm4, %v326_v40, %v276_v47 }
  0xc5   :  { %v285_v51 = vsel %vm282_vm5, %v284_v48, %v280_v49 }
  0xc6   :  { %v287_v52 = vmul.f32 %v328_v50, %v285_v51 }
  0xc8   :  { %288 = vst [vmem:[#allocation13] sm:$0x3] %v287_v52 }
  0xc9   :  { %299 = dma.vmem_to_hbm [thread:$0]  %s295_s28, 32, %s297_s9, [#allocation6]  }
  0xca   :  { %479 = dma.done.wait [#allocation6], 32  }
  0xcb   :  { %480 = vsyncadd [#allocation6], 4294967264 }
  0xcc   :  { %304 = vsyncpa [#allocation5], 1 }
  0xcd   :  { %305 = vsyncpa [#allocation8], 1 }
  0xce   :  { %306 = vsyncpa [#allocation11], 1 }
  0xcf   :  { %307 = vsyncpa [#allocation6], 1 }

</bundles_post_ra>
